<compile_context>
chip_gen: v7x
topology: tpu7x:2x2x1
jax: 0.10.0
libtpu: 0.0.40
codegen_flags: <defaults>
</compile_context>

<pallas_src>
import functools

import jax
import jax.numpy as jnp
from jax.experimental import pallas as pl
from jax.experimental.pallas import tpu as pltpu

COMMISSION_C = 0.0025  # self.c in the PyTorch module

# TODO(synk): `datautils.price_change` source not provided; assumed standard
# PGPortfolio semantics: prepend a cash asset with relative price exactly 1.0 at
# column 0. That cash column is folded analytically instead of materializing
# `changes` (verify against the real data pipeline before shipping).
# TODO(synk): the (B, M) -> (M, B) transposes below are the remaining wrapper-side
# HBM passes; if the upstream network/dataloader can emit batch-minor layouts
# (and/or bf16 inputs) they should be removed and the arrays fed straight in.


def _round_up(x, n):
    return -(-x // n) * n


def _reward_kernel(x_ref, y_ref, lw_ref, pv_ref, psum_ref, *, total_b, block_b):
    """One lane-tile (TB batch columns) of the reward computation.

    x_ref   : (M,   TB) portfolio weights, cash at row 0, batch on lanes
    y_ref   : (M-1, TB) relative price changes of non-cash assets
    lw_ref  : (M,   TB) previous weights, cash at row 0
    pv_ref  : (1,   TB) portfolio value output
    psum_ref: (1, 1, 1) per-block partial sum of log(pv)
    """
    x_nc = x_ref[1:, :].astype(jnp.float32)     # (M-1, TB) non-cash target weights
    y = y_ref[...].astype(jnp.float32)          # (M-1, TB)
    lw0 = lw_ref[0:1, :].astype(jnp.float32)    # (1,   TB) cash previous weight
    lw_nc = lw_ref[1:, :].astype(jnp.float32)   # (M-1, TB)

    # changes * last_w with the cash column (changes == 1) folded in analytically.
    cl_nc = y * lw_nc                                           # (M-1, TB)
    s = lw0 + jnp.sum(cl_nc, axis=0, keepdims=True)             # (1, TB) row sums
    inv_s = pl.reciprocal(s, approx=False)                      # exact; keeps 1e-5 tol

    # transaction-cost term excludes the cash column by construction ([:, 1:]).
    cost = jnp.sum(jnp.abs(cl_nc * inv_s - x_nc), axis=0, keepdims=True)  # (1, TB)
    mu = 1.0 - COMMISSION_C * cost                              # (1, TB)
    pv = s * mu                                                 # (1, TB) portfolio value

    log_pv = jnp.log(pv)
    if total_b % block_b != 0:
        # Ragged last block: lanes past the true batch hold unspecified data from
        # the clipped input DMA; exclude them from the partial sum. Their pv
        # write-back falls outside the output array and is discarded by Pallas.
        lane = jax.lax.broadcasted_iota(jnp.int32, log_pv.shape, 1)
        valid = pl.program_id(0) * block_b + lane < total_b
        log_pv = jnp.where(valid, log_pv, 0.0)

    pv_ref[...] = pv
    psum_ref[0] = jnp.sum(log_pv, axis=1, keepdims=True)        # (1, 1)


def reward_loss(x, y, last_w, *, block_b=None, vmem_budget_bytes=12 << 20):
    """Pallas TPU implementation of RewardLoss.forward.

    x, last_w : (B, M) portfolio weights, cash at column 0
    y         : (B, M-1) relative price changes of non-cash assets
    Returns (reward: scalar f32, portfolio_value: (B,) f32).
    """
    b, m = x.shape
    assert m >= 2 and y.shape == (b, m - 1) and last_w.shape == (b, m)

    # Single whole-array transposes to a lane-dense (asset-major, batch-minor)
    # layout; cash rows are split off inside the kernel via static sublane slices.
    x_t = jnp.transpose(x)          # (M,   B)
    y_t = jnp.transpose(y)          # (M-1, B)
    lw_t = jnp.transpose(last_w)    # (M,   B)

    # --- tile size: fill a VMEM budget, keep >=2 grid steps for v7x megacore. ---
    if block_b is None:
        per_lane_bytes = 2 * (3 * m) * 4      # double-buffered f32 rows per lane
        block_b = max(128, min((vmem_budget_bytes // per_lane_bytes) // 128 * 128,
                               65536))
    if b <= 128:
        tb = b                                 # tiny batch: single full-extent block
    else:
        tb = max(128, min(block_b, (b // 128) * 128))
        if b > 256:                            # >=2 grid steps -> both v7x TCs
            tb = min(tb, _round_up((b + 1) // 2, 128))
    grid_b = -(-b // tb)

    kernel = functools.partial(_reward_kernel, total_b=b, block_b=tb)

    # Explicit VMEM ceiling: double-buffered inputs + outputs + headroom, portable
    # across v5e (16 MiB scoped default) / v6e / v7x (64 MiB physical).
    vmem_limit = int(min(2 * (3 * m + 2) * 4 * tb + (8 << 20), 64 << 20))

    pv_row, log_psum = pl.pallas_call(
        kernel,
        out_shape=(
            jax.ShapeDtypeStruct((1, b), jnp.float32),           # portfolio value
            jax.ShapeDtypeStruct((grid_b, 1, 1), jnp.float32),   # partial sums of log(pv)
        ),
        grid=(grid_b,),
        in_specs=[
            pl.BlockSpec((m, tb), lambda i: (0, i)),
            pl.BlockSpec((m - 1, tb), lambda i: (0, i)),
            pl.BlockSpec((m, tb), lambda i: (0, i)),
        ],
        out_specs=(
            pl.BlockSpec((1, tb), lambda i: (0, i)),
            pl.BlockSpec((1, 1, 1), lambda i: (i, 0, 0)),
        ),
        compiler_params=pltpu.CompilerParams(
            dimension_semantics=("parallel",),
            vmem_limit_bytes=vmem_limit,
        ),
    )(x_t, y_t, lw_t)

    pv = pv_row[0]
    reward = -(jnp.sum(log_psum) / b)          # divide by true batch, not padded
    return reward, pv


def _reference(x, y, last_w):
    b = y.shape[0]
    changes = jnp.concatenate([jnp.ones((b, 1), dtype=y.dtype), y], axis=1)
    cl = changes * last_w
    s = jnp.sum(cl, axis=1, keepdims=True)
    wt_prime = cl / s
    mu = 1.0 - jnp.sum(jnp.abs(wt_prime - x)[:, 1:], axis=1) * COMMISSION_C
    pv = s[:, 0] * mu
    return -jnp.mean(jnp.log(pv)), pv


def _make_inputs(key, b, m):
    k1, k2, k3 = jax.random.split(key, 3)
    x = jax.nn.softmax(jax.random.normal(k1, (b, m)), axis=1)
    last_w = jax.nn.softmax(jax.random.normal(k2, (b, m)), axis=1)
    y = 1.0 + 0.05 * jax.random.normal(k3, (b, m - 1))
    return x, y, last_w


if __name__ == "__main__":
    key = jax.random.PRNGKey(0)
    kA, kB = jax.random.split(key)

    # Small case: B=2 samples, M=8 assets including cash (single full-extent block).
    B, M = 2, 8
    x, y, last_w = _make_inputs(kA, B, M)
    reward, pv = reward_loss(x, y, last_w)
    jax.block_until_ready((reward, pv))
    ref_reward, ref_pv = _reference(x, y, last_w)
    assert jnp.allclose(reward, ref_reward, atol=1e-5, rtol=1e-5)
    assert jnp.allclose(pv, ref_pv, atol=1e-5, rtol=1e-5)

    # Tiled case: exercises the lane grid (3 blocks), the ragged-last-block mask
    # (260 = 2*128 + 4), and the per-block partial-sum reduction path.
    B2 = 260
    x2, y2, last_w2 = _make_inputs(kB, B2, M)
    reward2, pv2 = reward_loss(x2, y2, last_w2, block_b=128)
    jax.block_until_ready((reward2, pv2))
    ref_reward2, ref_pv2 = _reference(x2, y2, last_w2)
    assert jnp.allclose(reward2, ref_reward2, atol=1e-5, rtol=1e-5)
    assert jnp.allclose(pv2, ref_pv2, atol=1e-5, rtol=1e-5)

    # Default (VMEM-budget-derived) tiling on the larger batch as well.
    reward3, pv3 = reward_loss(x2, y2, last_w2)
    jax.block_until_ready((reward3, pv3))
    assert jnp.allclose(reward3, ref_reward2, atol=1e-5, rtol=1e-5)
    assert jnp.allclose(pv3, ref_pv2, atol=1e-5, rtol=1e-5)

    print("KERNEL_OK")
</pallas_src>

<mosaic_0001>
module attributes {stable_mosaic.version = 11 : i64} {
  func.func @_reward_kernel(%arg0: i32, %arg1: memref<8x2xf32, #tpu.memory_space<vmem>>, %arg2: memref<7x2xf32, #tpu.memory_space<vmem>>, %arg3: memref<8x2xf32, #tpu.memory_space<vmem>>, %arg4: memref<1x2xf32, #tpu.memory_space<vmem>>, %arg5: memref<1x1x1xf32, #tpu.memory_space<vmem>>) attributes {dimension_semantics = [#tpu.dimension_semantics<parallel>], iteration_bounds = array<i64: 1>, scalar_prefetch = 0 : i64, scratch_operands = 0 : i64, tpu.core_type = #tpu.core_type<tc>, window_params = [{transform_indices = @transform_0, window_bounds = array<i64: 8, 2>}, {transform_indices = @transform_1, window_bounds = array<i64: 7, 2>}, {transform_indices = @transform_2, window_bounds = array<i64: 8, 2>}, {transform_indices = @transform_3, window_bounds = array<i64: 1, 2>}, {transform_indices = @transform_4, window_bounds = array<i64: 1, 1, 1>}]} {
    %c1 = arith.constant 1 : index
    %c0 = arith.constant 0 : index
    %0 = vector.load %arg1[%c1, %c0] : memref<8x2xf32, #tpu.memory_space<vmem>>, vector<7x2xf32>
    %c0_0 = arith.constant 0 : index
    %c0_1 = arith.constant 0 : index
    %1 = vector.load %arg2[%c0_0, %c0_1] : memref<7x2xf32, #tpu.memory_space<vmem>>, vector<7x2xf32>
    %c0_2 = arith.constant 0 : index
    %c0_3 = arith.constant 0 : index
    %2 = vector.load %arg3[%c0_2, %c0_3] : memref<8x2xf32, #tpu.memory_space<vmem>>, vector<1x2xf32>
    %c1_4 = arith.constant 1 : index
    %c0_5 = arith.constant 0 : index
    %3 = vector.load %arg3[%c1_4, %c0_5] : memref<8x2xf32, #tpu.memory_space<vmem>>, vector<7x2xf32>
    %4 = arith.mulf %1, %3 : vector<7x2xf32>
    %cst = arith.constant dense<0.000000e+00> : vector<2xf32>
    %5 = vector.multi_reduction <add>, %4, %cst [0] : vector<7x2xf32> to vector<2xf32>
    %6 = vector.shape_cast %5 : vector<2xf32> to vector<1x2xf32>
    %7 = arith.addf %2, %6 : vector<1x2xf32>
    %8 = tpu.reciprocal %7 : vector<1x2xf32> -> vector<1x2xf32>
    %9 = vector.broadcast %8 : vector<1x2xf32> to vector<7x2xf32>
    %10 = arith.mulf %4, %9 : vector<7x2xf32>
    %11 = arith.subf %10, %0 : vector<7x2xf32>
    %12 = math.absf %11 : vector<7x2xf32>
    %cst_6 = arith.constant dense<0.000000e+00> : vector<2xf32>
    %13 = vector.multi_reduction <add>, %12, %cst_6 [0] : vector<7x2xf32> to vector<2xf32>
    %14 = vector.shape_cast %13 : vector<2xf32> to vector<1x2xf32>
    %cst_7 = arith.constant 2.500000e-03 : f32
    %15 = vector.broadcast %cst_7 : f32 to vector<1x2xf32>
    %16 = arith.mulf %15, %14 : vector<1x2xf32>
    %cst_8 = arith.constant 1.000000e+00 : f32
    %17 = vector.broadcast %cst_8 : f32 to vector<1x2xf32>
    %18 = arith.subf %17, %16 : vector<1x2xf32>
    %19 = arith.mulf %7, %18 : vector<1x2xf32>
    %20 = math.log %19 : vector<1x2xf32>
    %c0_9 = arith.constant 0 : index
    %c0_10 = arith.constant 0 : index
    %21 = vector.load %arg4[%c0_9, %c0_10] : memref<1x2xf32, #tpu.memory_space<vmem>>, vector<1x2xf32>
    tpu.vector_store %arg4[%c0_9, %c0_10], %19 {strides = array<i32>} : memref<1x2xf32, #tpu.memory_space<vmem>>, vector<1x2xf32>,
    %cst_11 = arith.constant dense<0.000000e+00> : vector<1xf32>
    %22 = vector.multi_reduction <add>, %20, %cst_11 [1] : vector<1x2xf32> to vector<1xf32>
    %23 = vector.shape_cast %22 : vector<1xf32> to vector<1x1xf32>
    %c0_12 = arith.constant 0 : index
    %c0_13 = arith.constant 0 : index
    %c0_14 = arith.constant 0 : index
    %24 = vector.load %arg5[%c0_12, %c0_13, %c0_14] : memref<1x1x1xf32, #tpu.memory_space<vmem>>, vector<1x1x1xf32>
    %25 = vector.shape_cast %24 : vector<1x1x1xf32> to vector<1x1xf32>
    %26 = vector.shape_cast %23 : vector<1x1xf32> to vector<1x1x1xf32>
    tpu.vector_store %arg5[%c0_12, %c0_13, %c0_14], %26 {strides = array<i32>} : memref<1x1x1xf32, #tpu.memory_space<vmem>>, vector<1x1x1xf32>,
    return
  }
  func.func @transform_0(%arg0: i32) -> (i32, i32) {
    %c0_i32 = arith.constant 0 : i32
    %c0_i32_0 = arith.constant 0 : i32
    return %c0_i32, %arg0 : i32, i32
  }
  func.func @transform_1(%arg0: i32) -> (i32, i32) {
    %c0_i32 = arith.constant 0 : i32
    %c0_i32_0 = arith.constant 0 : i32
    return %c0_i32, %arg0 : i32, i32
  }
  func.func @transform_2(%arg0: i32) -> (i32, i32) {
    %c0_i32 = arith.constant 0 : i32
    %c0_i32_0 = arith.constant 0 : i32
    return %c0_i32, %arg0 : i32, i32
  }
  func.func @transform_3(%arg0: i32) -> (i32, i32) {
    %c0_i32 = arith.constant 0 : i32
    %c0_i32_0 = arith.constant 0 : i32
    return %c0_i32, %arg0 : i32, i32
  }
  func.func @transform_4(%arg0: i32) -> (i32, i32, i32) {
    %c0_i32 = arith.constant 0 : i32
    %c0_i32_0 = arith.constant 0 : i32
    %c0_i32_1 = arith.constant 0 : i32
    return %arg0, %c0_i32, %c0_i32_0 : i32, i32, i32
  }
}

</mosaic_0001>

<bundles_post_ra>
// kernel: tpu_custom_call.1
= control target key start
LH: loop header
LB: loop body
LE: loop exit
PB: predicated region body
PF: predicated region fallthrough
CT: control target
= control target key end

     0   :  { %10 = vsyncpa [#allocation3], 0  ;;  %vm23_vm0 = vcmask 14336   ;;  %s206_s0 = inlined_call_operand.vmem [shape: f32[8,2], index: 0, kind: input, shape index: {}]   ;;  %s207_s1 = inlined_call_operand.vmem [shape: f32[7,2], index: 1, kind: input, shape index: {}]   ;;  %s208_s2 = inlined_call_operand.vmem [shape: f32[8,2], index: 2, kind: input, shape index: {}]   ;;  %s209_s3 = inlined_call_operand.hbm [shape: f32[1,2], index: 3, kind: output, shape index: {0}]   ;;  %s210_s4 = inlined_call_operand.hbm [shape: f32[1,1,1], index: 4, kind: output, shape index: {1}]  }
   0x1   :  { %v19_v0 = vld [vmem:[%s207_s1] sm:$0x7f] }
   0x2   :  { %v21_v1 = vld [vmem:[%s208_s2 + $0x1] sm:$0x7f] }
   0x3   :  { %11 = vsyncpa [#allocation5], 0  ;;  %v22_v2 = vmul.f32 %v21_v1, %v19_v0  ;;  %v20_v9 = vld [vmem:[%s208_s2] sm:$0x1]  ;;  %v33_v12 = vlaneseq  ;;  %v18_v17 = vld [vmem:[%s206_s0 + $0x1] sm:$0x7f] }
   0x4   :  { %vm52_vm1 = vcmask 8192   ;;  %s141_s0 = smov [#allocation2]  }
   0x5   :  { %v24_v3 = vsel %vm23_vm0, %v22_v2, 0.0  ;;  %v34_v13 = vshrl.u32 %v33_v12, 7  ;;  %s65_s2 = sshll.u32 %s141_s0, 4  ;;  %s66_s2 = int_to_ptr.vmem [resolvable:$true] %s65_s2 }
   0x6   :  { %v25_v4 = vrot.slane %v24_v3, 4  ;;  %s93_s22 = scalar_lea.vmem %s66_s2, 16  ;;  %s97_s23 = scalar_lea.vmem %s66_s2, 32 }
   0x7   :  { %v35_v14 = vsub.s32 0, %v34_v13  ;;  %p94_p0 = scmp.ne.s32.totalorder %s66_s2, %s93_s22  ;;  %p98_p1 = scmp.lt.s32.totalorder %s66_s2, %s66_s2 }
   0x8   :  { %v26_v5 = vadd.f32 %v25_v4, %v24_v3  ;;  %p99_p2 = scmp.lt.s32.totalorder %s97_s23, %s93_s22 }
   0xa   :  { %v27_v6 = vrot.slane %v26_v5, 2  ;;  %p100_p3 = por %p99_p2, %p98_p1 }
   0xc   :  { %v28_v7 = vadd.f32 %v27_v6, %v26_v5  ;;  %p101_p4 = pnand %p100_p3, %p94_p0 }
   0xe   :  { %v29_v8 = vrot.slane %v28_v7, 1 }
  0x10   :  { %v30_v10 = vadd.f32 %v29_v8, %v28_v7 }
  0x12   :  { %v31_v11 = vadd.f32 %v30_v10, %v20_v9 }
  0x14   :  { %89 = vrcp.f32 %v31_v11 }
  0x1e   :  { %v90_v15 = vpop.eup %89 }
  0x1f   :  { %v36_v16 = vrot.slane %v90_v15, %v35_v14 }
  0x21   :  { %v37_v18 = vmul.f32 %v36_v16, %v22_v2 }
  0x23   :  { %v38_v19 = vsub.f32 %v37_v18, %v18_v17 }
  0x25   :  { %v39_v20 = vand.u32 2147483647, %v38_v19 }
  0x27   :  { %v40_v21 = vsel %vm23_vm0, %v39_v20, 0.0 }
  0x28   :  { %v41_v22 = vrot.slane %v40_v21, 4 }
  0x2a   :  { %v42_v23 = vadd.f32 %v41_v22, %v40_v21 }
  0x2c   :  { %v43_v24 = vrot.slane %v42_v23, 2 }
  0x2e   :  { %v44_v25 = vadd.f32 %v43_v24, %v42_v23 }
  0x30   :  { %v45_v26 = vrot.slane %v44_v25, 1 }
  0x32   :  { %v46_v27 = vadd.f32 %v45_v26, %v44_v25 }
  0x34   :  { %v47_v28 = vmul.f32 0.0025, %v46_v27 }
  0x36   :  { %v48_v29 = vsub.f32 1.0, %v47_v28 }
  0x38   :  { %v49_v30 = vmul.f32 %v48_v29, %v31_v11 }
  0x3a   :  { %91 = vlog2.f32 %v49_v30  ;;  %53 = vst.msk [vmem:[#allocation2] sm:$0x1] %vm52_vm1, %v49_v30 }
  0x44   :  { %v92_v31 = vpop.eup %91 }
  0x45   :  { %v51_v32 = vmul.f32 0.6931472, %v92_v31 }
  0x47   :  { %v54_v33 = vsel %vm52_vm1, %v51_v32, 0.0 }
  0x48   :  { %55 = vadd.xlane.f32.xlu0 %v54_v33 }
  0x49   :  { %104 = shalt.err (!%p101_p4)
}
  0x4a   :  { %s105_s26 = scalar_lea.hbm %s209_s3, 16 }
  0x4b   :  { %p106_p5 = scmp.ne.s32.totalorder %s209_s3, %s105_s26  ;;  %p109_p6 = scmp.lt.u32.totalorder %s105_s26, %s209_s3 }
  0x4d   :  { %p111_p7 = pnand %p109_p6, %p106_p5 }
  0x4f   :  { %114 = shalt.err (!%p111_p7)
}
  0x50   :  { %68 = dma.vmem_to_hbm [thread:$0]  %s66_s2, 16, %s209_s3, [#allocation3]   ;;  %vm57_vm2 = vcmask 0  }
  0x51   :  { %s142_s7 = smov [#allocation4]  }
  0x52   :  { %s75_s8 = sshll.u32 %s142_s7, 4  ;;  %s76_s8 = int_to_ptr.vmem [resolvable:$true] %s75_s8 }
  0x53   :  { %s115_s9 = scalar_lea.vmem %s76_s8, 16  ;;  %s119_s10 = scalar_lea.vmem %s76_s8, 32 }
  0x54   :  { %p116_p8 = scmp.ne.s32.totalorder %s76_s8, %s115_s9  ;;  %p120_p9 = scmp.lt.s32.totalorder %s76_s8, %s76_s8 }
  0x55   :  { %p121_p10 = scmp.lt.s32.totalorder %s119_s10, %s115_s9 }
  0x57   :  { %p122_p11 = por %p121_p10, %p120_p9 }
  0x59   :  { %p123_p12 = pnand %p122_p11, %p116_p8 }
  0xd5   :  { %v56_v34 = vpop.xlane.xlu0 %55 }
  0xd6   :  { %58 = vst.msk [vmem:[#allocation4] sm:$0x1] %vm57_vm2, %v56_v34 }
  0xd7   :  { %126 = shalt.err (!%p123_p12)
}
  0xd8   :  { %s127_s13 = scalar_lea.hbm %s210_s4, 16 }
  0xd9   :  { %p128_p13 = scmp.ne.s32.totalorder %s210_s4, %s127_s13  ;;  %p131_p0 = scmp.lt.u32.totalorder %s127_s13, %s210_s4 }
  0xdb   :  { %p133_p1 = pnand %p131_p0, %p128_p13 }
  0xdd   :  { %136 = shalt.err (!%p133_p1)
}
  0xde   :  { %78 = dma.vmem_to_hbm [thread:$0]  %s76_s8, 16, %s210_s4, [#allocation5]  }
  0xdf   :  { %137 = dma.done.wait [#allocation3], 16  }
  0xe0   :  { %138 = vsyncadd [#allocation3], 4294967280 }
  0xe1   :  { %139 = dma.done.wait [#allocation5], 16  }
  0xe2   :  { %140 = vsyncadd [#allocation5], 4294967280 }
  0xe3   :  { %85 = vsyncpa [#allocation3], 1 }
  0xe4   :  { %86 = vsyncpa [#allocation5], 1 }

</bundles_post_ra>
